<compile_context>
chip_gen: v6e
topology: v6e:2x2x1
jax: 0.10.0
libtpu: 0.0.40
codegen_flags: <defaults>
</compile_context>

<pallas_src>
import functools

import jax
import jax.numpy as jnp
from jax import lax
from jax.experimental import pallas as pl
from jax.experimental.pallas import tpu as pltpu


def _dsconv_kernel(x_ref, dwt_ref, pw_ref, b_ref, out_ref, *, H, W, N, C, O):
    """Fused depthwise(3x3, pad=1) + pointwise(1x1) on one lane-dense slab.

    x_ref  : (N*C, H*W)    VMEM  all images/channels, spatial flattened
    dwt_ref: (9, N*C, H*W) VMEM  depthwise tap weights, pre-masked for the
                                 zero-padding border and pre-broadcast along
                                 lanes; tap k = (dy+1)*3 + (dx+1)
    pw_ref : (O*C,)        SMEM  pointwise weights, pw_ref[o*C + c] = pw_w[o,c]
    b_ref  : (O,)          SMEM  pointwise bias with depthwise bias folded in
    out_ref: (N*O, H*W)    VMEM
    """
    HW = H * W
    x = x_ref[...]  # (N*C, HW) f32 -- 2 full vregs at the test size

    # ---- depthwise 3x3: 8 static lane rotations (XLU) + 9 FMAs (VALU) ----
    # Neighbor (h+dy, w+dx) of flattened position p lives at p + dy*W + dx;
    # rolling by -d brings it to position p.  Out-of-image taps are already
    # zeroed because the border masks were folded into dwt_ref on the host.
    acc = dwt_ref[4] * x  # center tap (dy=0, dx=0)
    for dy in (-1, 0, 1):
        for dx in (-1, 0, 1):
            if dy == 0 and dx == 0:
                continue
            k = (dy + 1) * 3 + (dx + 1)
            d = dy * W + dx
            acc = acc + dwt_ref[k] * pltpu.roll(x, shift=(-d) % HW, axis=1)

    # ---- pointwise 1x1: SMEM scalar weights, scalar x vector FMAs ----
    rows = [acc[r:r + 1, :] for r in range(N * C)]  # (1, HW) slices, reused O times
    for n in range(N):
        for o in range(O):
            v = pw_ref[o * C] * rows[n * C]
            for c in range(1, C):
                v = v + pw_ref[o * C + c] * rows[n * C + c]
            out_ref[pl.ds(n * O + o, 1), :] = v + b_ref[o]


def depthwise_separable_conv3(x, dw_w, dw_b, pw_w, pw_b):
    """Forward of DepthwiseSeparableConv3.

    x: (N, C, H, W) f32.  dw_w: (C, 3, 3), dw_b: (C,), pw_w: (O, C), pw_b: (O,).
    Returns (N, O, H, W) f32.
    """
    N, C, H, W = x.shape
    O = pw_w.shape[0]
    HW = H * W
    f32 = jnp.float32
    assert HW % 128 == 0, "lane-dense layout assumes H*W is a multiple of 128"

    # -- glue: lane-dense flattening (pure reshape, no data movement) -------
    x_flat = x.reshape(N * C, HW).astype(f32)

    # -- host-side weight prep (hoist out of any training loop) -------------
    pos = jnp.arange(HW, dtype=jnp.int32)
    h_idx = pos // W
    w_idx = pos % W
    dw_taps = dw_w.astype(f32).reshape(C, 9).T            # (9, C), tap-major
    dw_rows = jnp.tile(dw_taps, (1, N))                   # (9, N*C): row n*C+c -> channel c
    masks = []
    for dy in (-1, 0, 1):
        for dx in (-1, 0, 1):
            m = jnp.ones((HW,), f32)
            if dy == -1:
                m = m * (h_idx >= 1)
            elif dy == 1:
                m = m * (h_idx <= H - 2)
            if dx == -1:
                m = m * (w_idx >= 1)
            elif dx == 1:
                m = m * (w_idx <= W - 2)
            masks.append(m)
    mask = jnp.stack(masks)                                # (9, HW)
    # Masked, lane-broadcast depthwise weights: (9, N*C, HW) (~72 KiB here).
    dwt_masked = dw_rows[:, :, None] * mask[:, None, :]

    # Pointwise weights as SMEM scalars; fold the depthwise bias through the
    # pointwise weights (exact algebra):
    #   pw @ (dwconv(x) + dw_b) + pw_b == pw @ dwconv(x) + (pw @ dw_b + pw_b)
    pw_flat = pw_w.astype(f32).reshape(O * C)              # pw_flat[o*C + c]
    bias = pw_b.astype(f32) + pw_w.astype(f32) @ dw_b.astype(f32)   # (O,)

    kernel = functools.partial(_dsconv_kernel, H=H, W=W, N=N, C=C, O=O)

    out_flat = pl.pallas_call(
        kernel,
        out_shape=jax.ShapeDtypeStruct((N * O, HW), f32),
        in_specs=[
            pl.BlockSpec(memory_space=pltpu.MemorySpace.VMEM),   # x slab
            pl.BlockSpec(memory_space=pltpu.MemorySpace.VMEM),   # masked dw taps
            pl.BlockSpec(memory_space=pltpu.MemorySpace.SMEM),   # pw scalars
            pl.BlockSpec(memory_space=pltpu.MemorySpace.SMEM),   # folded bias
        ],
        out_specs=pl.BlockSpec(memory_space=pltpu.MemorySpace.VMEM),
    )(x_flat, dwt_masked, pw_flat, bias)

    return out_flat.reshape(N, O, H, W)


def _reference(x, dw_w, dw_b, pw_w, pw_b):
    """Pure-JAX reference (NCHW convs) for correctness checking."""
    C = x.shape[1]
    O = pw_w.shape[0]
    y = lax.conv_general_dilated(
        x, dw_w.reshape(C, 1, 3, 3),
        window_strides=(1, 1), padding=((1, 1), (1, 1)),
        dimension_numbers=("NCHW", "OIHW", "NCHW"),
        feature_group_count=C)
    y = y + dw_b.reshape(1, C, 1, 1)
    z = lax.conv_general_dilated(
        y, pw_w.reshape(O, C, 1, 1),
        window_strides=(1, 1), padding=((0, 0), (0, 0)),
        dimension_numbers=("NCHW", "OIHW", "NCHW"))
    return z + pw_b.reshape(1, O, 1, 1)


if __name__ == "__main__":
    N, C, O, H, W = 2, 4, 8, 16, 16

    key = jax.random.PRNGKey(0)
    kx, k1, k2, k3, k4 = jax.random.split(key, 5)

    x = jax.random.normal(kx, (N, C, H, W), jnp.float32)
    dw_w = jax.random.normal(k1, (C, 3, 3), jnp.float32) * 0.2   # depthwise.weight (C,1,3,3) squeezed
    dw_b = jax.random.normal(k2, (C,), jnp.float32) * 0.1        # depthwise.bias
    pw_w = jax.random.normal(k3, (O, C), jnp.float32) * 0.2      # pointwise.weight (O,C,1,1) squeezed
    pw_b = jax.random.normal(k4, (O,), jnp.float32) * 0.1        # pointwise.bias

    out = depthwise_separable_conv3(x, dw_w, dw_b, pw_w, pw_b)
    out = jax.block_until_ready(out)

    ref = _reference(x, dw_w, dw_b, pw_w, pw_b)
    assert out.shape == (N, O, H, W)
    assert jnp.allclose(out, ref, atol=1e-4, rtol=1e-4), "mismatch vs reference"

    print("KERNEL_OK")
</pallas_src>

<mosaic_0001>
module attributes {stable_mosaic.version = 11 : i64} {
  func.func @_dsconv_kernel(%arg0: memref<8x256xf32, #tpu.memory_space<vmem>>, %arg1: memref<9x8x256xf32, #tpu.memory_space<vmem>>, %arg2: memref<32xf32, #tpu.memory_space<smem>>, %arg3: memref<8xf32, #tpu.memory_space<smem>>, %arg4: memref<16x256xf32, #tpu.memory_space<vmem>>) attributes {dimension_semantics = [], scalar_prefetch = 0 : i64, scratch_operands = 0 : i64, tpu.core_type = #tpu.core_type<tc>} {
    %c0 = arith.constant 0 : index
    %c0_0 = arith.constant 0 : index
    %0 = vector.load %arg0[%c0, %c0_0] : memref<8x256xf32, #tpu.memory_space<vmem>>, vector<8x256xf32>
    %c4 = arith.constant 4 : index
    %c0_1 = arith.constant 0 : index
    %c0_2 = arith.constant 0 : index
    %1 = vector.load %arg1[%c4, %c0_1, %c0_2] : memref<9x8x256xf32, #tpu.memory_space<vmem>>, vector<1x8x256xf32>
    %2 = vector.shape_cast %1 : vector<1x8x256xf32> to vector<8x256xf32>
    %3 = arith.mulf %2, %0 : vector<8x256xf32>
    %c0_3 = arith.constant 0 : index
    %c0_4 = arith.constant 0 : index
    %c0_5 = arith.constant 0 : index
    %4 = vector.load %arg1[%c0_3, %c0_4, %c0_5] : memref<9x8x256xf32, #tpu.memory_space<vmem>>, vector<1x8x256xf32>
    %5 = vector.shape_cast %4 : vector<1x8x256xf32> to vector<8x256xf32>
    %c17_i32 = arith.constant 17 : i32
    %6 = tpu.dynamic_rotate %0 by %c17_i32 dim 1 : vector<8x256xf32>, i32 -> vector<8x256xf32>
    %7 = arith.mulf %5, %6 : vector<8x256xf32>
    %8 = arith.addf %3, %7 : vector<8x256xf32>
    %c1 = arith.constant 1 : index
    %c0_6 = arith.constant 0 : index
    %c0_7 = arith.constant 0 : index
    %9 = vector.load %arg1[%c1, %c0_6, %c0_7] : memref<9x8x256xf32, #tpu.memory_space<vmem>>, vector<1x8x256xf32>
    %10 = vector.shape_cast %9 : vector<1x8x256xf32> to vector<8x256xf32>
    %c16_i32 = arith.constant 16 : i32
    %11 = tpu.dynamic_rotate %0 by %c16_i32 dim 1 : vector<8x256xf32>, i32 -> vector<8x256xf32>
    %12 = arith.mulf %10, %11 : vector<8x256xf32>
    %13 = arith.addf %8, %12 : vector<8x256xf32>
    %c2 = arith.constant 2 : index
    %c0_8 = arith.constant 0 : index
    %c0_9 = arith.constant 0 : index
    %14 = vector.load %arg1[%c2, %c0_8, %c0_9] : memref<9x8x256xf32, #tpu.memory_space<vmem>>, vector<1x8x256xf32>
    %15 = vector.shape_cast %14 : vector<1x8x256xf32> to vector<8x256xf32>
    %c15_i32 = arith.constant 15 : i32
    %16 = tpu.dynamic_rotate %0 by %c15_i32 dim 1 : vector<8x256xf32>, i32 -> vector<8x256xf32>
    %17 = arith.mulf %15, %16 : vector<8x256xf32>
    %18 = arith.addf %13, %17 : vector<8x256xf32>
    %c3 = arith.constant 3 : index
    %c0_10 = arith.constant 0 : index
    %c0_11 = arith.constant 0 : index
    %19 = vector.load %arg1[%c3, %c0_10, %c0_11] : memref<9x8x256xf32, #tpu.memory_space<vmem>>, vector<1x8x256xf32>
    %20 = vector.shape_cast %19 : vector<1x8x256xf32> to vector<8x256xf32>
    %c1_i32 = arith.constant 1 : i32
    %21 = tpu.dynamic_rotate %0 by %c1_i32 dim 1 : vector<8x256xf32>, i32 -> vector<8x256xf32>
    %22 = arith.mulf %20, %21 : vector<8x256xf32>
    %23 = arith.addf %18, %22 : vector<8x256xf32>
    %c5 = arith.constant 5 : index
    %c0_12 = arith.constant 0 : index
    %c0_13 = arith.constant 0 : index
    %24 = vector.load %arg1[%c5, %c0_12, %c0_13] : memref<9x8x256xf32, #tpu.memory_space<vmem>>, vector<1x8x256xf32>
    %25 = vector.shape_cast %24 : vector<1x8x256xf32> to vector<8x256xf32>
    %c255_i32 = arith.constant 255 : i32
    %26 = tpu.dynamic_rotate %0 by %c255_i32 dim 1 : vector<8x256xf32>, i32 -> vector<8x256xf32>
    %27 = arith.mulf %25, %26 : vector<8x256xf32>
    %28 = arith.addf %23, %27 : vector<8x256xf32>
    %c6 = arith.constant 6 : index
    %c0_14 = arith.constant 0 : index
    %c0_15 = arith.constant 0 : index
    %29 = vector.load %arg1[%c6, %c0_14, %c0_15] : memref<9x8x256xf32, #tpu.memory_space<vmem>>, vector<1x8x256xf32>
    %30 = vector.shape_cast %29 : vector<1x8x256xf32> to vector<8x256xf32>
    %c241_i32 = arith.constant 241 : i32
    %31 = tpu.dynamic_rotate %0 by %c241_i32 dim 1 : vector<8x256xf32>, i32 -> vector<8x256xf32>
    %32 = arith.mulf %30, %31 : vector<8x256xf32>
    %33 = arith.addf %28, %32 : vector<8x256xf32>
    %c7 = arith.constant 7 : index
    %c0_16 = arith.constant 0 : index
    %c0_17 = arith.constant 0 : index
    %34 = vector.load %arg1[%c7, %c0_16, %c0_17] : memref<9x8x256xf32, #tpu.memory_space<vmem>>, vector<1x8x256xf32>
    %35 = vector.shape_cast %34 : vector<1x8x256xf32> to vector<8x256xf32>
    %c240_i32 = arith.constant 240 : i32
    %36 = tpu.dynamic_rotate %0 by %c240_i32 dim 1 : vector<8x256xf32>, i32 -> vector<8x256xf32>
    %37 = arith.mulf %35, %36 : vector<8x256xf32>
    %38 = arith.addf %33, %37 : vector<8x256xf32>
    %c8 = arith.constant 8 : index
    %c0_18 = arith.constant 0 : index
    %c0_19 = arith.constant 0 : index
    %39 = vector.load %arg1[%c8, %c0_18, %c0_19] : memref<9x8x256xf32, #tpu.memory_space<vmem>>, vector<1x8x256xf32>
    %40 = vector.shape_cast %39 : vector<1x8x256xf32> to vector<8x256xf32>
    %c239_i32 = arith.constant 239 : i32
    %41 = tpu.dynamic_rotate %0 by %c239_i32 dim 1 : vector<8x256xf32>, i32 -> vector<8x256xf32>
    %42 = arith.mulf %40, %41 : vector<8x256xf32>
    %43 = arith.addf %38, %42 : vector<8x256xf32>
    %44 = vector.extract_strided_slice %43 {offsets = [0, 0], sizes = [1, 256], strides = [1, 1]} : vector<8x256xf32> to vector<1x256xf32>
    %45 = vector.extract_strided_slice %43 {offsets = [1, 0], sizes = [1, 256], strides = [1, 1]} : vector<8x256xf32> to vector<1x256xf32>
    %46 = vector.extract_strided_slice %43 {offsets = [2, 0], sizes = [1, 256], strides = [1, 1]} : vector<8x256xf32> to vector<1x256xf32>
    %47 = vector.extract_strided_slice %43 {offsets = [3, 0], sizes = [1, 256], strides = [1, 1]} : vector<8x256xf32> to vector<1x256xf32>
    %48 = vector.extract_strided_slice %43 {offsets = [4, 0], sizes = [1, 256], strides = [1, 1]} : vector<8x256xf32> to vector<1x256xf32>
    %49 = vector.extract_strided_slice %43 {offsets = [5, 0], sizes = [1, 256], strides = [1, 1]} : vector<8x256xf32> to vector<1x256xf32>
    %50 = vector.extract_strided_slice %43 {offsets = [6, 0], sizes = [1, 256], strides = [1, 1]} : vector<8x256xf32> to vector<1x256xf32>
    %51 = vector.extract_strided_slice %43 {offsets = [7, 0], sizes = [1, 256], strides = [1, 1]} : vector<8x256xf32> to vector<1x256xf32>
    %c0_20 = arith.constant 0 : index
    %52 = memref.load %arg2[%c0_20] : memref<32xf32, #tpu.memory_space<smem>>
    %53 = vector.broadcast %52 : f32 to vector<1x256xf32>
    %54 = arith.mulf %53, %44 : vector<1x256xf32>
    %c1_21 = arith.constant 1 : index
    %55 = memref.load %arg2[%c1_21] : memref<32xf32, #tpu.memory_space<smem>>
    %56 = vector.broadcast %55 : f32 to vector<1x256xf32>
    %57 = arith.mulf %56, %45 : vector<1x256xf32>
    %58 = arith.addf %54, %57 : vector<1x256xf32>
    %c2_22 = arith.constant 2 : index
    %59 = memref.load %arg2[%c2_22] : memref<32xf32, #tpu.memory_space<smem>>
    %60 = vector.broadcast %59 : f32 to vector<1x256xf32>
    %61 = arith.mulf %60, %46 : vector<1x256xf32>
    %62 = arith.addf %58, %61 : vector<1x256xf32>
    %c3_23 = arith.constant 3 : index
    %63 = memref.load %arg2[%c3_23] : memref<32xf32, #tpu.memory_space<smem>>
    %64 = vector.broadcast %63 : f32 to vector<1x256xf32>
    %65 = arith.mulf %64, %47 : vector<1x256xf32>
    %66 = arith.addf %62, %65 : vector<1x256xf32>
    %c0_24 = arith.constant 0 : index
    %67 = memref.load %arg3[%c0_24] : memref<8xf32, #tpu.memory_space<smem>>
    %68 = vector.broadcast %67 : f32 to vector<1x256xf32>
    %69 = arith.addf %66, %68 : vector<1x256xf32>
    %c0_25 = arith.constant 0 : index
    %c0_26 = arith.constant 0 : index
    %70 = vector.load %arg4[%c0_25, %c0_26] : memref<16x256xf32, #tpu.memory_space<vmem>>, vector<1x256xf32>
    tpu.vector_store %arg4[%c0_25, %c0_26], %69 {strides = array<i32>} : memref<16x256xf32, #tpu.memory_space<vmem>>, vector<1x256xf32>,
    %c4_27 = arith.constant 4 : index
    %71 = memref.load %arg2[%c4_27] : memref<32xf32, #tpu.memory_space<smem>>
    %72 = vector.broadcast %71 : f32 to vector<1x256xf32>
    %73 = arith.mulf %72, %44 : vector<1x256xf32>
    %c5_28 = arith.constant 5 : index
    %74 = memref.load %arg2[%c5_28] : memref<32xf32, #tpu.memory_space<smem>>
    %75 = vector.broadcast %74 : f32 to vector<1x256xf32>
    %76 = arith.mulf %75, %45 : vector<1x256xf32>
    %77 = arith.addf %73, %76 : vector<1x256xf32>
    %c6_29 = arith.constant 6 : index
    %78 = memref.load %arg2[%c6_29] : memref<32xf32, #tpu.memory_space<smem>>
    %79 = vector.broadcast %78 : f32 to vector<1x256xf32>
    %80 = arith.mulf %79, %46 : vector<1x256xf32>
    %81 = arith.addf %77, %80 : vector<1x256xf32>
    %c7_30 = arith.constant 7 : index
    %82 = memref.load %arg2[%c7_30] : memref<32xf32, #tpu.memory_space<smem>>
    %83 = vector.broadcast %82 : f32 to vector<1x256xf32>
    %84 = arith.mulf %83, %47 : vector<1x256xf32>
    %85 = arith.addf %81, %84 : vector<1x256xf32>
    %c1_31 = arith.constant 1 : index
    %86 = memref.load %arg3[%c1_31] : memref<8xf32, #tpu.memory_space<smem>>
    %87 = vector.broadcast %86 : f32 to vector<1x256xf32>
    %88 = arith.addf %85, %87 : vector<1x256xf32>
    %c1_32 = arith.constant 1 : index
    %c0_33 = arith.constant 0 : index
    %89 = vector.load %arg4[%c1_32, %c0_33] : memref<16x256xf32, #tpu.memory_space<vmem>>, vector<1x256xf32>
    tpu.vector_store %arg4[%c1_32, %c0_33], %88 {strides = array<i32>} : memref<16x256xf32, #tpu.memory_space<vmem>>, vector<1x256xf32>,
    %c8_34 = arith.constant 8 : index
    %90 = memref.load %arg2[%c8_34] : memref<32xf32, #tpu.memory_space<smem>>
    %91 = vector.broadcast %90 : f32 to vector<1x256xf32>
    %92 = arith.mulf %91, %44 : vector<1x256xf32>
    %c9 = arith.constant 9 : index
    %93 = memref.load %arg2[%c9] : memref<32xf32, #tpu.memory_space<smem>>
    %94 = vector.broadcast %93 : f32 to vector<1x256xf32>
    %95 = arith.mulf %94, %45 : vector<1x256xf32>
    %96 = arith.addf %92, %95 : vector<1x256xf32>
    %c10 = arith.constant 10 : index
    %97 = memref.load %arg2[%c10] : memref<32xf32, #tpu.memory_space<smem>>
    %98 = vector.broadcast %97 : f32 to vector<1x256xf32>
    %99 = arith.mulf %98, %46 : vector<1x256xf32>
    %100 = arith.addf %96, %99 : vector<1x256xf32>
    %c11 = arith.constant 11 : index
    %101 = memref.load %arg2[%c11] : memref<32xf32, #tpu.memory_space<smem>>
    %102 = vector.broadcast %101 : f32 to vector<1x256xf32>
    %103 = arith.mulf %102, %47 : vector<1x256xf32>
    %104 = arith.addf %100, %103 : vector<1x256xf32>
    %c2_35 = arith.constant 2 : index
    %105 = memref.load %arg3[%c2_35] : memref<8xf32, #tpu.memory_space<smem>>
    %106 = vector.broadcast %105 : f32 to vector<1x256xf32>
    %107 = arith.addf %104, %106 : vector<1x256xf32>
    %c2_36 = arith.constant 2 : index
    %c0_37 = arith.constant 0 : index
    %108 = vector.load %arg4[%c2_36, %c0_37] : memref<16x256xf32, #tpu.memory_space<vmem>>, vector<1x256xf32>
    tpu.vector_store %arg4[%c2_36, %c0_37], %107 {strides = array<i32>} : memref<16x256xf32, #tpu.memory_space<vmem>>, vector<1x256xf32>,
    %c12 = arith.constant 12 : index
    %109 = memref.load %arg2[%c12] : memref<32xf32, #tpu.memory_space<smem>>
    %110 = vector.broadcast %109 : f32 to vector<1x256xf32>
    %111 = arith.mulf %110, %44 : vector<1x256xf32>
    %c13 = arith.constant 13 : index
    %112 = memref.load %arg2[%c13] : memref<32xf32, #tpu.memory_space<smem>>
    %113 = vector.broadcast %112 : f32 to vector<1x256xf32>
    %114 = arith.mulf %113, %45 : vector<1x256xf32>
    %115 = arith.addf %111, %114 : vector<1x256xf32>
    %c14 = arith.constant 14 : index
    %116 = memref.load %arg2[%c14] : memref<32xf32, #tpu.memory_space<smem>>
    %117 = vector.broadcast %116 : f32 to vector<1x256xf32>
    %118 = arith.mulf %117, %46 : vector<1x256xf32>
    %119 = arith.addf %115, %118 : vector<1x256xf32>
    %c15 = arith.constant 15 : index
    %120 = memref.load %arg2[%c15] : memref<32xf32, #tpu.memory_space<smem>>
    %121 = vector.broadcast %120 : f32 to vector<1x256xf32>
    %122 = arith.mulf %121, %47 : vector<1x256xf32>
    %123 = arith.addf %119, %122 : vector<1x256xf32>
    %c3_38 = arith.constant 3 : index
    %124 = memref.load %arg3[%c3_38] : memref<8xf32, #tpu.memory_space<smem>>
    %125 = vector.broadcast %124 : f32 to vector<1x256xf32>
    %126 = arith.addf %123, %125 : vector<1x256xf32>
    %c3_39 = arith.constant 3 : index
    %c0_40 = arith.constant 0 : index
    %127 = vector.load %arg4[%c3_39, %c0_40] : memref<16x256xf32, #tpu.memory_space<vmem>>, vector<1x256xf32>
    tpu.vector_store %arg4[%c3_39, %c0_40], %126 {strides = array<i32>} : memref<16x256xf32, #tpu.memory_space<vmem>>, vector<1x256xf32>,
    %c16 = arith.constant 16 : index
    %128 = memref.load %arg2[%c16] : memref<32xf32, #tpu.memory_space<smem>>
    %129 = vector.broadcast %128 : f32 to vector<1x256xf32>
    %130 = arith.mulf %129, %44 : vector<1x256xf32>
    %c17 = arith.constant 17 : index
    %131 = memref.load %arg2[%c17] : memref<32xf32, #tpu.memory_space<smem>>
    %132 = vector.broadcast %131 : f32 to vector<1x256xf32>
    %133 = arith.mulf %132, %45 : vector<1x256xf32>
    %134 = arith.addf %130, %133 : vector<1x256xf32>
    %c18 = arith.constant 18 : index
    %135 = memref.load %arg2[%c18] : memref<32xf32, #tpu.memory_space<smem>>
    %136 = vector.broadcast %135 : f32 to vector<1x256xf32>
    %137 = arith.mulf %136, %46 : vector<1x256xf32>
    %138 = arith.addf %134, %137 : vector<1x256xf32>
    %c19 = arith.constant 19 : index
    %139 = memref.load %arg2[%c19] : memref<32xf32, #tpu.memory_space<smem>>
    %140 = vector.broadcast %139 : f32 to vector<1x256xf32>
    %141 = arith.mulf %140, %47 : vector<1x256xf32>
    %142 = arith.addf %138, %141 : vector<1x256xf32>
    %c4_41 = arith.constant 4 : index
    %143 = memref.load %arg3[%c4_41] : memref<8xf32, #tpu.memory_space<smem>>
    %144 = vector.broadcast %143 : f32 to vector<1x256xf32>
    %145 = arith.addf %142, %144 : vector<1x256xf32>
    %c4_42 = arith.constant 4 : index
    %c0_43 = arith.constant 0 : index
    %146 = vector.load %arg4[%c4_42, %c0_43] : memref<16x256xf32, #tpu.memory_space<vmem>>, vector<1x256xf32>
    tpu.vector_store %arg4[%c4_42, %c0_43], %145 {strides = array<i32>} : memref<16x256xf32, #tpu.memory_space<vmem>>, vector<1x256xf32>,
    %c20 = arith.constant 20 : index
    %147 = memref.load %arg2[%c20] : memref<32xf32, #tpu.memory_space<smem>>
    %148 = vector.broadcast %147 : f32 to vector<1x256xf32>
    %149 = arith.mulf %148, %44 : vector<1x256xf32>
    %c21 = arith.constant 21 : index
    %150 = memref.load %arg2[%c21] : memref<32xf32, #tpu.memory_space<smem>>
    %151 = vector.broadcast %150 : f32 to vector<1x256xf32>
    %152 = arith.mulf %151, %45 : vector<1x256xf32>
    %153 = arith.addf %149, %152 : vector<1x256xf32>
    %c22 = arith.constant 22 : index
    %154 = memref.load %arg2[%c22] : memref<32xf32, #tpu.memory_space<smem>>
    %155 = vector.broadcast %154 : f32 to vector<1x256xf32>
    %156 = arith.mulf %155, %46 : vector<1x256xf32>
    %157 = arith.addf %153, %156 : vector<1x256xf32>
    %c23 = arith.constant 23 : index
    %158 = memref.load %arg2[%c23] : memref<32xf32, #tpu.memory_space<smem>>
    %159 = vector.broadcast %158 : f32 to vector<1x256xf32>
    %160 = arith.mulf %159, %47 : vector<1x256xf32>
    %161 = arith.addf %157, %160 : vector<1x256xf32>
    %c5_44 = arith.constant 5 : index
    %162 = memref.load %arg3[%c5_44] : memref<8xf32, #tpu.memory_space<smem>>
    %163 = vector.broadcast %162 : f32 to vector<1x256xf32>
    %164 = arith.addf %161, %163 : vector<1x256xf32>
    %c5_45 = arith.constant 5 : index
    %c0_46 = arith.constant 0 : index
    %165 = vector.load %arg4[%c5_45, %c0_46] : memref<16x256xf32, #tpu.memory_space<vmem>>, vector<1x256xf32>
    tpu.vector_store %arg4[%c5_45, %c0_46], %164 {strides = array<i32>} : memref<16x256xf32, #tpu.memory_space<vmem>>, vector<1x256xf32>,
    %c24 = arith.constant 24 : index
    %166 = memref.load %arg2[%c24] : memref<32xf32, #tpu.memory_space<smem>>
    %167 = vector.broadcast %166 : f32 to vector<1x256xf32>
    %168 = arith.mulf %167, %44 : vector<1x256xf32>
    %c25 = arith.constant 25 : index
    %169 = memref.load %arg2[%c25] : memref<32xf32, #tpu.memory_space<smem>>
    %170 = vector.broadcast %169 : f32 to vector<1x256xf32>
    %171 = arith.mulf %170, %45 : vector<1x256xf32>
    %172 = arith.addf %168, %171 : vector<1x256xf32>
    %c26 = arith.constant 26 : index
    %173 = memref.load %arg2[%c26] : memref<32xf32, #tpu.memory_space<smem>>
    %174 = vector.broadcast %173 : f32 to vector<1x256xf32>
    %175 = arith.mulf %174, %46 : vector<1x256xf32>
    %176 = arith.addf %172, %175 : vector<1x256xf32>
    %c27 = arith.constant 27 : index
    %177 = memref.load %arg2[%c27] : memref<32xf32, #tpu.memory_space<smem>>
    %178 = vector.broadcast %177 : f32 to vector<1x256xf32>
    %179 = arith.mulf %178, %47 : vector<1x256xf32>
    %180 = arith.addf %176, %179 : vector<1x256xf32>
    %c6_47 = arith.constant 6 : index
    %181 = memref.load %arg3[%c6_47] : memref<8xf32, #tpu.memory_space<smem>>
    %182 = vector.broadcast %181 : f32 to vector<1x256xf32>
    %183 = arith.addf %180, %182 : vector<1x256xf32>
    %c6_48 = arith.constant 6 : index
    %c0_49 = arith.constant 0 : index
    %184 = vector.load %arg4[%c6_48, %c0_49] : memref<16x256xf32, #tpu.memory_space<vmem>>, vector<1x256xf32>
    tpu.vector_store %arg4[%c6_48, %c0_49], %183 {strides = array<i32>} : memref<16x256xf32, #tpu.memory_space<vmem>>, vector<1x256xf32>,
    %c28 = arith.constant 28 : index
    %185 = memref.load %arg2[%c28] : memref<32xf32, #tpu.memory_space<smem>>
    %186 = vector.broadcast %185 : f32 to vector<1x256xf32>
    %187 = arith.mulf %186, %44 : vector<1x256xf32>
    %c29 = arith.constant 29 : index
    %188 = memref.load %arg2[%c29] : memref<32xf32, #tpu.memory_space<smem>>
    %189 = vector.broadcast %188 : f32 to vector<1x256xf32>
    %190 = arith.mulf %189, %45 : vector<1x256xf32>
    %191 = arith.addf %187, %190 : vector<1x256xf32>
    %c30 = arith.constant 30 : index
    %192 = memref.load %arg2[%c30] : memref<32xf32, #tpu.memory_space<smem>>
    %193 = vector.broadcast %192 : f32 to vector<1x256xf32>
    %194 = arith.mulf %193, %46 : vector<1x256xf32>
    %195 = arith.addf %191, %194 : vector<1x256xf32>
    %c31 = arith.constant 31 : index
    %196 = memref.load %arg2[%c31] : memref<32xf32, #tpu.memory_space<smem>>
    %197 = vector.broadcast %196 : f32 to vector<1x256xf32>
    %198 = arith.mulf %197, %47 : vector<1x256xf32>
    %199 = arith.addf %195, %198 : vector<1x256xf32>
    %c7_50 = arith.constant 7 : index
    %200 = memref.load %arg3[%c7_50] : memref<8xf32, #tpu.memory_space<smem>>
    %201 = vector.broadcast %200 : f32 to vector<1x256xf32>
    %202 = arith.addf %199, %201 : vector<1x256xf32>
    %c7_51 = arith.constant 7 : index
    %c0_52 = arith.constant 0 : index
    %203 = vector.load %arg4[%c7_51, %c0_52] : memref<16x256xf32, #tpu.memory_space<vmem>>, vector<1x256xf32>
    tpu.vector_store %arg4[%c7_51, %c0_52], %202 {strides = array<i32>} : memref<16x256xf32, #tpu.memory_space<vmem>>, vector<1x256xf32>,
    %c0_53 = arith.constant 0 : index
    %204 = memref.load %arg2[%c0_53] : memref<32xf32, #tpu.memory_space<smem>>
    %205 = vector.broadcast %204 : f32 to vector<1x256xf32>
    %206 = arith.mulf %205, %48 : vector<1x256xf32>
    %c1_54 = arith.constant 1 : index
    %207 = memref.load %arg2[%c1_54] : memref<32xf32, #tpu.memory_space<smem>>
    %208 = vector.broadcast %207 : f32 to vector<1x256xf32>
    %209 = arith.mulf %208, %49 : vector<1x256xf32>
    %210 = arith.addf %206, %209 : vector<1x256xf32>
    %c2_55 = arith.constant 2 : index
    %211 = memref.load %arg2[%c2_55] : memref<32xf32, #tpu.memory_space<smem>>
    %212 = vector.broadcast %211 : f32 to vector<1x256xf32>
    %213 = arith.mulf %212, %50 : vector<1x256xf32>
    %214 = arith.addf %210, %213 : vector<1x256xf32>
    %c3_56 = arith.constant 3 : index
    %215 = memref.load %arg2[%c3_56] : memref<32xf32, #tpu.memory_space<smem>>
    %216 = vector.broadcast %215 : f32 to vector<1x256xf32>
    %217 = arith.mulf %216, %51 : vector<1x256xf32>
    %218 = arith.addf %214, %217 : vector<1x256xf32>
    %c0_57 = arith.constant 0 : index
    %219 = memref.load %arg3[%c0_57] : memref<8xf32, #tpu.memory_space<smem>>
    %220 = vector.broadcast %219 : f32 to vector<1x256xf32>
    %221 = arith.addf %218, %220 : vector<1x256xf32>
    %c8_58 = arith.constant 8 : index
    %c0_59 = arith.constant 0 : index
    %222 = vector.load %arg4[%c8_58, %c0_59] : memref<16x256xf32, #tpu.memory_space<vmem>>, vector<1x256xf32>
    tpu.vector_store %arg4[%c8_58, %c0_59], %221 {strides = array<i32>} : memref<16x256xf32, #tpu.memory_space<vmem>>, vector<1x256xf32>,
    %c4_60 = arith.constant 4 : index
    %223 = memref.load %arg2[%c4_60] : memref<32xf32, #tpu.memory_space<smem>>
    %224 = vector.broadcast %223 : f32 to vector<1x256xf32>
    %225 = arith.mulf %224, %48 : vector<1x256xf32>
    %c5_61 = arith.constant 5 : index
    %226 = memref.load %arg2[%c5_61] : memref<32xf32, #tpu.memory_space<smem>>
    %227 = vector.broadcast %226 : f32 to vector<1x256xf32>
    %228 = arith.mulf %227, %49 : vector<1x256xf32>
    %229 = arith.addf %225, %228 : vector<1x256xf32>
    %c6_62 = arith.constant 6 : index
    %230 = memref.load %arg2[%c6_62] : memref<32xf32, #tpu.memory_space<smem>>
    %231 = vector.broadcast %230 : f32 to vector<1x256xf32>
    %232 = arith.mulf %231, %50 : vector<1x256xf32>
    %233 = arith.addf %229, %232 : vector<1x256xf32>
    %c7_63 = arith.constant 7 : index
    %234 = memref.load %arg2[%c7_63] : memref<32xf32, #tpu.memory_space<smem>>
    %235 = vector.broadcast %234 : f32 to vector<1x256xf32>
    %236 = arith.mulf %235, %51 : vector<1x256xf32>
    %237 = arith.addf %233, %236 : vector<1x256xf32>
    %c1_64 = arith.constant 1 : index
    %238 = memref.load %arg3[%c1_64] : memref<8xf32, #tpu.memory_space<smem>>
    %239 = vector.broadcast %238 : f32 to vector<1x256xf32>
    %240 = arith.addf %237, %239 : vector<1x256xf32>
    %c9_65 = arith.constant 9 : index
    %c0_66 = arith.constant 0 : index
    %241 = vector.load %arg4[%c9_65, %c0_66] : memref<16x256xf32, #tpu.memory_space<vmem>>, vector<1x256xf32>
    tpu.vector_store %arg4[%c9_65, %c0_66], %240 {strides = array<i32>} : memref<16x256xf32, #tpu.memory_space<vmem>>, vector<1x256xf32>,
    %c8_67 = arith.constant 8 : index
    %242 = memref.load %arg2[%c8_67] : memref<32xf32, #tpu.memory_space<smem>>
    %243 = vector.broadcast %242 : f32 to vector<1x256xf32>
    %244 = arith.mulf %243, %48 : vector<1x256xf32>
    %c9_68 = arith.constant 9 : index
    %245 = memref.load %arg2[%c9_68] : memref<32xf32, #tpu.memory_space<smem>>
    %246 = vector.broadcast %245 : f32 to vector<1x256xf32>
    %247 = arith.mulf %246, %49 : vector<1x256xf32>
    %248 = arith.addf %244, %247 : vector<1x256xf32>
    %c10_69 = arith.constant 10 : index
    %249 = memref.load %arg2[%c10_69] : memref<32xf32, #tpu.memory_space<smem>>
    %250 = vector.broadcast %249 : f32 to vector<1x256xf32>
    %251 = arith.mulf %250, %50 : vector<1x256xf32>
    %252 = arith.addf %248, %251 : vector<1x256xf32>
    %c11_70 = arith.constant 11 : index
    %253 = memref.load %arg2[%c11_70] : memref<32xf32, #tpu.memory_space<smem>>
    %254 = vector.broadcast %253 : f32 to vector<1x256xf32>
    %255 = arith.mulf %254, %51 : vector<1x256xf32>
    %256 = arith.addf %252, %255 : vector<1x256xf32>
    %c2_71 = arith.constant 2 : index
    %257 = memref.load %arg3[%c2_71] : memref<8xf32, #tpu.memory_space<smem>>
    %258 = vector.broadcast %257 : f32 to vector<1x256xf32>
    %259 = arith.addf %256, %258 : vector<1x256xf32>
    %c10_72 = arith.constant 10 : index
    %c0_73 = arith.constant 0 : index
    %260 = vector.load %arg4[%c10_72, %c0_73] : memref<16x256xf32, #tpu.memory_space<vmem>>, vector<1x256xf32>
    tpu.vector_store %arg4[%c10_72, %c0_73], %259 {strides = array<i32>} : memref<16x256xf32, #tpu.memory_space<vmem>>, vector<1x256xf32>,
    %c12_74 = arith.constant 12 : index
    %261 = memref.load %arg2[%c12_74] : memref<32xf32, #tpu.memory_space<smem>>
    %262 = vector.broadcast %261 : f32 to vector<1x256xf32>
    %263 = arith.mulf %262, %48 : vector<1x256xf32>
    %c13_75 = arith.constant 13 : index
    %264 = memref.load %arg2[%c13_75] : memref<32xf32, #tpu.memory_space<smem>>
    %265 = vector.broadcast %264 : f32 to vector<1x256xf32>
    %266 = arith.mulf %265, %49 : vector<1x256xf32>
    %267 = arith.addf %263, %266 : vector<1x256xf32>
    %c14_76 = arith.constant 14 : index
    %268 = memref.load %arg2[%c14_76] : memref<32xf32, #tpu.memory_space<smem>>
    %269 = vector.broadcast %268 : f32 to vector<1x256xf32>
    %270 = arith.mulf %269, %50 : vector<1x256xf32>
    %271 = arith.addf %267, %270 : vector<1x256xf32>
    %c15_77 = arith.constant 15 : index
    %272 = memref.load %arg2[%c15_77] : memref<32xf32, #tpu.memory_space<smem>>
    %273 = vector.broadcast %272 : f32 to vector<1x256xf32>
    %274 = arith.mulf %273, %51 : vector<1x256xf32>
    %275 = arith.addf %271, %274 : vector<1x256xf32>
    %c3_78 = arith.constant 3 : index
    %276 = memref.load %arg3[%c3_78] : memref<8xf32, #tpu.memory_space<smem>>
    %277 = vector.broadcast %276 : f32 to vector<1x256xf32>
    %278 = arith.addf %275, %277 : vector<1x256xf32>
    %c11_79 = arith.constant 11 : index
    %c0_80 = arith.constant 0 : index
    %279 = vector.load %arg4[%c11_79, %c0_80] : memref<16x256xf32, #tpu.memory_space<vmem>>, vector<1x256xf32>
    tpu.vector_store %arg4[%c11_79, %c0_80], %278 {strides = array<i32>} : memref<16x256xf32, #tpu.memory_space<vmem>>, vector<1x256xf32>,
    %c16_81 = arith.constant 16 : index
    %280 = memref.load %arg2[%c16_81] : memref<32xf32, #tpu.memory_space<smem>>
    %281 = vector.broadcast %280 : f32 to vector<1x256xf32>
    %282 = arith.mulf %281, %48 : vector<1x256xf32>
    %c17_82 = arith.constant 17 : index
    %283 = memref.load %arg2[%c17_82] : memref<32xf32, #tpu.memory_space<smem>>
    %284 = vector.broadcast %283 : f32 to vector<1x256xf32>
    %285 = arith.mulf %284, %49 : vector<1x256xf32>
    %286 = arith.addf %282, %285 : vector<1x256xf32>
    %c18_83 = arith.constant 18 : index
    %287 = memref.load %arg2[%c18_83] : memref<32xf32, #tpu.memory_space<smem>>
    %288 = vector.broadcast %287 : f32 to vector<1x256xf32>
    %289 = arith.mulf %288, %50 : vector<1x256xf32>
    %290 = arith.addf %286, %289 : vector<1x256xf32>
    %c19_84 = arith.constant 19 : index
    %291 = memref.load %arg2[%c19_84] : memref<32xf32, #tpu.memory_space<smem>>
    %292 = vector.broadcast %291 : f32 to vector<1x256xf32>
    %293 = arith.mulf %292, %51 : vector<1x256xf32>
    %294 = arith.addf %290, %293 : vector<1x256xf32>
    %c4_85 = arith.constant 4 : index
    %295 = memref.load %arg3[%c4_85] : memref<8xf32, #tpu.memory_space<smem>>
    %296 = vector.broadcast %295 : f32 to vector<1x256xf32>
    %297 = arith.addf %294, %296 : vector<1x256xf32>
    %c12_86 = arith.constant 12 : index
    %c0_87 = arith.constant 0 : index
    %298 = vector.load %arg4[%c12_86, %c0_87] : memref<16x256xf32, #tpu.memory_space<vmem>>, vector<1x256xf32>
    tpu.vector_store %arg4[%c12_86, %c0_87], %297 {strides = array<i32>} : memref<16x256xf32, #tpu.memory_space<vmem>>, vector<1x256xf32>,
    %c20_88 = arith.constant 20 : index
    %299 = memref.load %arg2[%c20_88] : memref<32xf32, #tpu.memory_space<smem>>
    %300 = vector.broadcast %299 : f32 to vector<1x256xf32>
    %301 = arith.mulf %300, %48 : vector<1x256xf32>
    %c21_89 = arith.constant 21 : index
    %302 = memref.load %arg2[%c21_89] : memref<32xf32, #tpu.memory_space<smem>>
    %303 = vector.broadcast %302 : f32 to vector<1x256xf32>
    %304 = arith.mulf %303, %49 : vector<1x256xf32>
    %305 = arith.addf %301, %304 : vector<1x256xf32>
    %c22_90 = arith.constant 22 : index
    %306 = memref.load %arg2[%c22_90] : memref<32xf32, #tpu.memory_space<smem>>
    %307 = vector.broadcast %306 : f32 to vector<1x256xf32>
    %308 = arith.mulf %307, %50 : vector<1x256xf32>
    %309 = arith.addf %305, %308 : vector<1x256xf32>
    %c23_91 = arith.constant 23 : index
    %310 = memref.load %arg2[%c23_91] : memref<32xf32, #tpu.memory_space<smem>>
    %311 = vector.broadcast %310 : f32 to vector<1x256xf32>
    %312 = arith.mulf %311, %51 : vector<1x256xf32>
    %313 = arith.addf %309, %312 : vector<1x256xf32>
    %c5_92 = arith.constant 5 : index
    %314 = memref.load %arg3[%c5_92] : memref<8xf32, #tpu.memory_space<smem>>
    %315 = vector.broadcast %314 : f32 to vector<1x256xf32>
    %316 = arith.addf %313, %315 : vector<1x256xf32>
    %c13_93 = arith.constant 13 : index
    %c0_94 = arith.constant 0 : index
    %317 = vector.load %arg4[%c13_93, %c0_94] : memref<16x256xf32, #tpu.memory_space<vmem>>, vector<1x256xf32>
    tpu.vector_store %arg4[%c13_93, %c0_94], %316 {strides = array<i32>} : memref<16x256xf32, #tpu.memory_space<vmem>>, vector<1x256xf32>,
    %c24_95 = arith.constant 24 : index
    %318 = memref.load %arg2[%c24_95] : memref<32xf32, #tpu.memory_space<smem>>
    %319 = vector.broadcast %318 : f32 to vector<1x256xf32>
    %320 = arith.mulf %319, %48 : vector<1x256xf32>
    %c25_96 = arith.constant 25 : index
    %321 = memref.load %arg2[%c25_96] : memref<32xf32, #tpu.memory_space<smem>>
    %322 = vector.broadcast %321 : f32 to vector<1x256xf32>
    %323 = arith.mulf %322, %49 : vector<1x256xf32>
    %324 = arith.addf %320, %323 : vector<1x256xf32>
    %c26_97 = arith.constant 26 : index
    %325 = memref.load %arg2[%c26_97] : memref<32xf32, #tpu.memory_space<smem>>
    %326 = vector.broadcast %325 : f32 to vector<1x256xf32>
    %327 = arith.mulf %326, %50 : vector<1x256xf32>
    %328 = arith.addf %324, %327 : vector<1x256xf32>
    %c27_98 = arith.constant 27 : index
    %329 = memref.load %arg2[%c27_98] : memref<32xf32, #tpu.memory_space<smem>>
    %330 = vector.broadcast %329 : f32 to vector<1x256xf32>
    %331 = arith.mulf %330, %51 : vector<1x256xf32>
    %332 = arith.addf %328, %331 : vector<1x256xf32>
    %c6_99 = arith.constant 6 : index
    %333 = memref.load %arg3[%c6_99] : memref<8xf32, #tpu.memory_space<smem>>
    %334 = vector.broadcast %333 : f32 to vector<1x256xf32>
    %335 = arith.addf %332, %334 : vector<1x256xf32>
    %c14_100 = arith.constant 14 : index
    %c0_101 = arith.constant 0 : index
    %336 = vector.load %arg4[%c14_100, %c0_101] : memref<16x256xf32, #tpu.memory_space<vmem>>, vector<1x256xf32>
    tpu.vector_store %arg4[%c14_100, %c0_101], %335 {strides = array<i32>} : memref<16x256xf32, #tpu.memory_space<vmem>>, vector<1x256xf32>,
    %c28_102 = arith.constant 28 : index
    %337 = memref.load %arg2[%c28_102] : memref<32xf32, #tpu.memory_space<smem>>
    %338 = vector.broadcast %337 : f32 to vector<1x256xf32>
    %339 = arith.mulf %338, %48 : vector<1x256xf32>
    %c29_103 = arith.constant 29 : index
    %340 = memref.load %arg2[%c29_103] : memref<32xf32, #tpu.memory_space<smem>>
    %341 = vector.broadcast %340 : f32 to vector<1x256xf32>
    %342 = arith.mulf %341, %49 : vector<1x256xf32>
    %343 = arith.addf %339, %342 : vector<1x256xf32>
    %c30_104 = arith.constant 30 : index
    %344 = memref.load %arg2[%c30_104] : memref<32xf32, #tpu.memory_space<smem>>
    %345 = vector.broadcast %344 : f32 to vector<1x256xf32>
    %346 = arith.mulf %345, %50 : vector<1x256xf32>
    %347 = arith.addf %343, %346 : vector<1x256xf32>
    %c31_105 = arith.constant 31 : index
    %348 = memref.load %arg2[%c31_105] : memref<32xf32, #tpu.memory_space<smem>>
    %349 = vector.broadcast %348 : f32 to vector<1x256xf32>
    %350 = arith.mulf %349, %51 : vector<1x256xf32>
    %351 = arith.addf %347, %350 : vector<1x256xf32>
    %c7_106 = arith.constant 7 : index
    %352 = memref.load %arg3[%c7_106] : memref<8xf32, #tpu.memory_space<smem>>
    %353 = vector.broadcast %352 : f32 to vector<1x256xf32>
    %354 = arith.addf %351, %353 : vector<1x256xf32>
    %c15_107 = arith.constant 15 : index
    %c0_108 = arith.constant 0 : index
    %355 = vector.load %arg4[%c15_107, %c0_108] : memref<16x256xf32, #tpu.memory_space<vmem>>, vector<1x256xf32>
    tpu.vector_store %arg4[%c15_107, %c0_108], %354 {strides = array<i32>} : memref<16x256xf32, #tpu.memory_space<vmem>>, vector<1x256xf32>,
    return
  }
}

</mosaic_0001>

<bundles_post_ra>
// kernel: tpu_custom_call.1
= control target key start
LH: loop header
LB: loop body
LE: loop exit
PB: predicated region body
PF: predicated region fallthrough
CT: control target
= control target key end

     0   :  { %s2029_s0 = inlined_call_operand.hbm [shape: f32[8,256], index: 0, kind: input, shape index: {}]   ;;  %s2030_s1 = inlined_call_operand.hbm [shape: f32[9,8,256], index: 1, kind: input, shape index: {}]   ;;  %s2031_s2 = inlined_call_operand.vmem [shape: f32[32], index: 2, kind: input, shape index: {}]   ;;  %s2032_s3 = inlined_call_operand.vmem [shape: f32[8], index: 3, kind: input, shape index: {}]   ;;  %s2033_s4 = inlined_call_operand.hbm [shape: f32[16,256], index: 4, kind: output, shape index: {}]  }
   0x1   :  { %2056 = sst [smem:[#allocation27_spill]] %s2033_s4 }
   0x2   :  { %9 = vsyncpa [#allocation3], 0 }
   0x3   :  { %10 = vsyncpa [#allocation7], 0 }
   0x4   :  { %11 = vsyncpa [#allocation5], 0 }
   0x5   :  { %12 = vsyncpa [#allocation10], 0 }
   0x6   :  { %13 = vsyncpa [#allocation4], 0  ;;  %s1437_s15 = smov [#allocation2]   ;;  %s1438_s17 = smov [#allocation6]  }
   0x7   :  { %s20_s16 = sshll.u32 %s1437_s15, 4  ;;  %s29_s18 = sshll.u32 %s1438_s17, 4  ;;  %s21_s16 = int_to_ptr.vmem [resolvable:$true] %s20_s16  ;;  %s30_s18 = int_to_ptr.vmem [resolvable:$true] %s29_s18 }
   0x8   :  { %s1351_s19 = scalar_lea.vmem %s21_s16, 256  ;;  %p1356_p1 = scmp.lt.s32.totalorder %s21_s16, %s21_s16 }
   0x9   :  { %p1352_p0 = scmp.ne.s32.totalorder %s21_s16, %s1351_s19  ;;  %p1357_p2 = scmp.lt.s32.totalorder %s1351_s19, %s1351_s19 }
   0xb   :  { %p1358_p3 = por %p1357_p2, %p1356_p1 }
   0xd   :  { %p1359_p4 = pnand %p1358_p3, %p1352_p0 }
   0xf   :  { %1362 = shalt.err (!%p1359_p4)
}
  0x10   :  { %23 = dma.hbm_to_vmem [thread:$0]  %s2029_s0, 256, %s21_s16, [#allocation3]  }
  0x11   :  { %s1371_s22 = scalar_lea.vmem %s30_s18, 2304  ;;  %p1376_p6 = scmp.lt.s32.totalorder %s30_s18, %s30_s18 }
  0x12   :  { %p1372_p5 = scmp.ne.s32.totalorder %s30_s18, %s1371_s22  ;;  %p1377_p7 = scmp.lt.s32.totalorder %s1371_s22, %s1371_s22 }
  0x14   :  { %p1378_p8 = por %p1377_p7, %p1376_p6 }
  0x16   :  { %p1379_p9 = pnand %p1378_p8, %p1372_p5 }
  0x18   :  { %1382 = shalt.err (!%p1379_p9)
}
  0x19   :  { %s2034_s23 = smov 256   ;;  %s2035_s24 = smov 16  }
  0x1a   :  { %35 = dma.hbm_to_vmem [thread:$0]  %s2030_s1, 2304, %s30_s18, [#allocation7], %s2034_s23, %s2034_s23, %s2035_s24  }
  0x1b   :  { %s42_s0 = sshll.u32 %s2031_s2, 4  ;;  %s52_s5 = sshll.u32 %s2032_s3, 4  ;;  %s43_s0 = int_to_ptr.vmem [resolvable:$true] %s42_s0  ;;  %s53_s5 = int_to_ptr.vmem [resolvable:$true] %s52_s5 }
  0x1c   :  { %s1383_s6 = scalar_lea.vmem %s43_s0, 16  ;;  %p1388_p11 = scmp.lt.s32.totalorder %s43_s0, %s43_s0 }
  0x1d   :  { %p1384_p10 = scmp.ne.s32.totalorder %s43_s0, %s1383_s6  ;;  %p1389_p12 = scmp.lt.s32.totalorder %s1383_s6, %s1383_s6 }
  0x1f   :  { %p1390_p13 = por %p1389_p12, %p1388_p11 }
  0x21   :  { %p1391_p0 = pnand %p1390_p13, %p1384_p10 }
  0x23   :  { %1394 = shalt.err (!%p1391_p0)
}
  0x24   :  { %s1441_s7 = smov [#allocation8]   ;;  %s1395_s1 = scalar_lea.vmem %s53_s5, 16 }
  0x25   :  { %45 = dma.vmem_to_smem %s43_s0, 16, %s1441_s7, [#allocation5]  }
  0x26   :  { %p1396_p1 = scmp.ne.s32.totalorder %s53_s5, %s1395_s1  ;;  %p1400_p2 = scmp.lt.s32.totalorder %s53_s5, %s53_s5 }
  0x27   :  { %p1401_p3 = scmp.lt.s32.totalorder %s1395_s1, %s1395_s1 }
  0x29   :  { %p1402_p4 = por %p1401_p3, %p1400_p2 }
  0x2b   :  { %p1403_p5 = pnand %p1402_p4, %p1396_p1 }
  0x2d   :  { %1406 = shalt.err (!%p1403_p5)
}
  0x2e   :  { %s1442_s2 = smov [#allocation9]  }
  0x2f   :  { %55 = dma.vmem_to_smem %s53_s5, 16, %s1442_s2, [#allocation10]  }
  0x30   :  { %1427 = dma.done.wait [#allocation3], 256  }
  0x31   :  { %1428 = vsyncadd [#allocation3], 4294967040 }
  0x32   :  { %1429 = dma.done.wait [#allocation7], 2304  }
  0x33   :  { %1430 = vsyncadd [#allocation7], 4294964992 }
  0x34   :  { %1431 = dma.done.wait [#allocation5], 16  }
  0x35   :  { %1432 = vsyncadd [#allocation5], 4294967280 }
  0x36   :  { %1433 = dma.done.wait [#allocation10], 16  }
  0x37   :  { %1434 = vsyncadd [#allocation10], 4294967280 }
  0x38   :  { %68 = sfence }
  0x39   :  { %v1492_v0 = vld [vmem:[#allocation2] sm:$0xff]  ;;  %s1443_s3 = smov 17   ;;  %v1497_v1 = vld [vmem:[#allocation2 + $0x8] sm:$0xff]  ;;  %s1444_s8 = smov 15   ;;  %v82_v2 = vlaneseq  ;;  %v1450_v6 = vmov 1966171168  }
  0x3a   :  { %94 = vrot.lane.b32.xlu1 %v1492_v0, %s2035_s24  ;;  %78 = vrot.lane.b32.xlu0 %v1492_v0, %s1443_s3  ;;  %s1445_s9 = smov 1   ;;  %s1446_s10 = smov 127   ;;  %v237_v7 = vunpack.c.l.s4 %v1450_v6  ;;  %v73_v10 = vld [vmem:[#allocation6 + $0x48] sm:$0xff]  ;;  %v72_v11 = vld [vmem:[#allocation6 + $0x40] sm:$0xff]  ;;  %v92_v27 = vld [vmem:[#allocation6 + $0x10] sm:$0xff] }
  0x3b   :  { %s1447_s11 = smov 113   ;;  %s1448_s12 = smov 112   ;;  %v1543_v5 = vand.u32 127, %v82_v2  ;;  %v76_v12 = vld [vmem:[#allocation6] sm:$0xff]  ;;  %v77_v13 = vld [vmem:[#allocation6 + $0x8] sm:$0xff]  ;;  %v240_v17 = vshrl.u32 %v82_v2, 7  ;;  %v75_v20 = vmul.f32 %v73_v10, %v1497_v1  ;;  %v74_v21 = vmul.f32 %v72_v11, %v1492_v0 }
  0x3c   :  { %s1449_s13 = smov 111   ;;  %s1514_s14 = sld [smem:[#allocation8]]  ;;  %v238_v16 = vunpack.c.0.s8 %v237_v7  ;;  %v93_v28 = vld [vmem:[#allocation6 + $0x18] sm:$0xff]  ;;  %v106_v37 = vld [vmem:[#allocation6 + $0x20] sm:$0xff]  ;;  %v107_v38 = vld [vmem:[#allocation6 + $0x28] sm:$0xff]  ;;  %vm1731_vm8 = vcmp.lt.s32.totalorder %v82_v2, 256 }
  0x3d   :  { %s1516_s15 = sld [smem:[#allocation8 + $0x1]]  ;;  %vm84_vm0 = vcmp.lt.s32.totalorder %v1543_v5, 17  ;;  %vm98_vm1 = vcmp.lt.s32.totalorder %v1543_v5, 16  ;;  %vm112_vm2 = vcmp.lt.s32.totalorder %v1543_v5, 15  ;;  %vm126_vm3 = vcmp.lt.s32.totalorder %v1543_v5, 1  ;;  %v120_v49 = vld [vmem:[#allocation6 + $0x30] sm:$0xff] }
  0x3e   :  { %96 = vrot.lane.b32.xlu1 %v1497_v1, %s2035_s24  ;;  %80 = vrot.lane.b32.xlu0 %v1497_v1, %s1443_s3  ;;  %s1518_s16 = sld [smem:[#allocation8 + $0x2]]  ;;  %v1575_v24 = vsub.s32 %v238_v16, %v240_v17  ;;  %vm140_vm4 = vcmp.lt.s32.totalorder %v1543_v5, 127  ;;  %vm154_vm5 = vcmp.lt.s32.totalorder %v1543_v5, 113  ;;  %vm168_vm6 = vcmp.lt.s32.totalorder %v1543_v5, 112  ;;  %v121_v50 = vld [vmem:[#allocation6 + $0x38] sm:$0xff]  ;;  %v134_v59 = vld [vmem:[#allocation6 + $0x50] sm:$0xff] }
  0x3f   :  { %s1520_s17 = sld [smem:[#allocation8 + $0x3]]  ;;  %vm182_vm7 = vcmp.lt.s32.totalorder %v1543_v5, 111  ;;  %v135_v60 = vld [vmem:[#allocation6 + $0x58] sm:$0xff]  ;;  %v149_v10 = vld [vmem:[#allocation6 + $0x68] sm:$0xff] }
  0x40   :  { %s1522_s18 = sld [smem:[#allocation8 + $0x4]] }
  0x41   :  { %s1524_s19 = sld [smem:[#allocation8 + $0x5]] }
  0x42   :  { %110 = vrot.lane.b32.xlu1 %v1497_v1, %s1444_s8  ;;  %108 = vrot.lane.b32.xlu0 %v1492_v0, %s1444_s8  ;;  %s1526_s20 = sld [smem:[#allocation8 + $0x6]]  ;;  %v190_v31 = vstv %s1514_s14 }
  0x43   :  { %s1528_s21 = sld [smem:[#allocation8 + $0x7]]  ;;  %v194_v32 = vstv %s1516_s15 }
  0x44   :  { %s1530_s22 = sld [smem:[#allocation8 + $0x8]]  ;;  %v206_v35 = vstv %s1518_s16 }
  0x45   :  { %s1532_s25 = sld [smem:[#allocation8 + $0x9]]  ;;  %v218_v36 = vstv %s1520_s17 }
  0x46   :  { %124 = vrot.lane.b32.xlu1 %v1497_v1, %s1445_s9  ;;  %122 = vrot.lane.b32.xlu0 %v1492_v0, %s1445_s9  ;;  %s1534_s26 = sld [smem:[#allocation8 + $0xa]]  ;;  %v258_v41 = vstv %s1522_s18 }
  0x47   :  { %2057 = sst [smem:[#allocation17_spill]] %s1524_s19  ;;  %v262_v42 = vstv %s1524_s19 }
  0x48   :  { %s1536_s27 = sld [smem:[#allocation9]]  ;;  %v274_v47 = vstv %s1526_s20 }
  0x49   :  { %2058 = sst [smem:[#allocation18_spill]] %s1528_s21  ;;  %v286_v48 = vstv %s1528_s21 }
  0x4a   :  { %138 = vrot.lane.b32.xlu1 %v1497_v1, %s1446_s10  ;;  %136 = vrot.lane.b32.xlu0 %v1492_v0, %s1446_s10  ;;  %2059 = sst [smem:[#allocation19_spill]] %s1530_s22  ;;  %v323_v53 = vstv %s1530_s22 }
  0x4b   :  { %2060 = sst [smem:[#allocation20_spill]] %s1532_s25  ;;  %v327_v54 = vstv %s1532_s25 }
  0x4c   :  { %2061 = sst [smem:[#allocation21_spill]] %s1534_s26 }
  0x4d   :  { %s1538_s28 = sld [smem:[#allocation8 + $0xb]] }
  0x4e   :  { %152 = vrot.lane.b32.xlu1 %v1497_v1, %s1447_s11  ;;  %150 = vrot.lane.b32.xlu0 %v1492_v0, %s1447_s11  ;;  %s1540_s0 = sld [smem:[#allocation8 + $0xc]]  ;;  %v230_v63 = vstv %s1536_s27 }
  0x4f   :  { %s1545_s29 = sld [smem:[#allocation9 + $0x1]] }
  0x50   :  { %s1547_s30 = sld [smem:[#allocation8 + $0xd]] }
  0x51   :  { %s1549_s5 = sld [smem:[#allocation8 + $0xe]] }
  0x52   :  { %166 = vrot.lane.b32.xlu1 %v1497_v1, %s1448_s12  ;;  %164 = vrot.lane.b32.xlu0 %v1492_v0, %s1448_s12  ;;  %s1551_s6 = sld [smem:[#allocation8 + $0xf]] }
  0x53   :  { %2062 = sst [smem:[#allocation22_spill]] %s1538_s28  ;;  %v351_v7 = vstv %s1538_s28 }
  0x54   :  { %2063 = sst [smem:[#allocation23_spill]] %s1540_s0 }
  0x55   :  { %s1554_s7 = sld [smem:[#allocation8 + $0x10]] }
  0x56   :  { %180 = vrot.lane.b32.xlu1 %v1497_v1, %s1449_s13  ;;  %178 = vrot.lane.b32.xlu0 %v1492_v0, %s1449_s13  ;;  %2064 = sst [smem:[#allocation24_spill]] %s1547_s30  ;;  %v339_v0 = vstv %s1534_s26 }
  0x57   :  { %s1556_s1 = sld [smem:[#allocation8 + $0x11]] }
  0x58   :  { %s1558_s2 = sld [smem:[#allocation8 + $0x12]] }
  0x59   :  { %s1560_s3 = sld [smem:[#allocation9 + $0x2]] }
  0x5a   :  { %s1563_s8 = sld [smem:[#allocation8 + $0x13]] }
  0x5b   :  { %s1566_s9 = sld [smem:[#allocation8 + $0x14]] }
  0x5c   :  { %s1570_s10 = sld [smem:[#allocation8 + $0x15]] }
  0x5d   :  { %2065 = sst [smem:[#allocation25_spill]] %s1556_s1 }
  0x5e   :  { %s1573_s11 = sld [smem:[#allocation8 + $0x16]] }
  0x5f   :  { %s1580_s12 = sld [smem:[#allocation9 + $0x3]] }
  0x60   :  { %s1588_s13 = sld [smem:[#allocation8 + $0x17]] }
  0x61   :  { %s1593_s23 = sld [smem:[#allocation8 + $0x18]] }
  0x62   :  { %s1601_s24 = sld [smem:[#allocation8 + $0x19]] }
  0x63   :  { %s1605_s4 = sld [smem:[#allocation9 + $0x4]] }
  0x64   :  { %s1613_s19 = sld [smem:[#allocation8 + $0x1a]] }
  0x65   :  { %s1616_s21 = sld [smem:[#allocation8 + $0x1b]] }
  0x66   :  { %s1624_s25 = sld [smem:[#allocation8 + $0x1c]] }
  0x67   :  { %s1628_s22 = sld [smem:[#allocation8 + $0x1d]] }
  0x68   :  { %s1636_s26 = sld [smem:[#allocation9 + $0x5]] }
  0x69   :  { %s1644_s28 = sld [smem:[#allocation8 + $0x1f]] }
  0x6b   :  { %v611_v5 = vstv %s1616_s21 }
  0x6c   :  { %2066 = sst [smem:[#allocation26_spill]] %s1624_s25 }
  0xac   :  { %v95_v3 = vpop.permute.xlu1 %94  ;;  %v79_v4 = vpop.permute.xlu0 %78 }
  0xb0   :  { %v97_v8 = vpop.permute.xlu1 %96  ;;  %v81_v9 = vpop.permute.xlu0 %80 }
  0xb1   :  { %v85_v14 = vsel %vm84_vm0, %v79_v4, %v81_v9  ;;  %v86_v15 = vsel %vm84_vm0, %v81_v9, %v79_v4  ;;  %v99_v29 = vsel %vm98_vm1, %v95_v3, %v97_v8  ;;  %v100_v30 = vsel %vm98_vm1, %v97_v8, %v95_v3  ;;  %v148_v9 = vld [vmem:[#allocation6 + $0x60] sm:$0xff] }
  0xb2   :  { %v87_v22 = vmul.f32 %v86_v15, %v76_v12  ;;  %v88_v23 = vmul.f32 %v85_v14, %v77_v13  ;;  %v101_v43 = vmul.f32 %v100_v30, %v92_v27  ;;  %v102_v44 = vmul.f32 %v99_v29, %v93_v28 }
  0xb3   :  { %v388_v8 = vstv %s1540_s0  ;;  %v298_v13 = vstv %s1545_s29  ;;  %v392_v14 = vstv %s1547_s30  ;;  %s1638_s0 = sld [smem:[#allocation8 + $0x1e]] }
  0xb4   :  { %v111_v18 = vpop.permute.xlu1 %110  ;;  %v109_v19 = vpop.permute.xlu0 %108  ;;  %v89_v33 = vadd.f32 %v87_v22, %v74_v21  ;;  %v90_v34 = vadd.f32 %v88_v23, %v75_v20  ;;  %v163_v20 = vld [vmem:[#allocation6 + $0x78] sm:$0xff]  ;;  %v404_v21 = vstv %s1549_s5  ;;  %v416_v22 = vstv %s1551_s6  ;;  %s1646_s30 = sld [smem:[#allocation9 + $0x6]] }
  0xb5   :  { %v113_v39 = vsel %vm112_vm2, %v109_v19, %v111_v18  ;;  %v114_v40 = vsel %vm112_vm2, %v111_v18, %v109_v19  ;;  %v162_v19 = vld [vmem:[#allocation6 + $0x70] sm:$0xff]  ;;  %v453_v23 = vstv %s1554_s7 }
  0xb6   :  { %v104_v55 = vadd.f32 %v102_v44, %v90_v34  ;;  %v103_v56 = vadd.f32 %v101_v43, %v89_v33  ;;  %v115_v57 = vmul.f32 %v114_v40, %v106_v37  ;;  %v116_v58 = vmul.f32 %v113_v39, %v107_v38 }
  0xb7   :  { %v363_v38 = vstv %s1560_s3  ;;  %v469_v39 = vstv %s1558_s2 }
  0xb8   :  { %v125_v25 = vpop.permute.xlu1 %124  ;;  %v123_v26 = vpop.permute.xlu0 %122  ;;  %v117_v15 = vadd.f32 %v115_v57, %v103_v56  ;;  %v118_v16 = vadd.f32 %v116_v58, %v104_v55  ;;  %v534_v55 = vstv %s1573_s11 }
  0xb9   :  { %v127_v51 = vsel %vm126_vm3, %v123_v26, %v125_v25  ;;  %v128_v52 = vsel %vm126_vm3, %v125_v25, %v123_v26  ;;  %v457_v25 = vstv %s1556_s1  ;;  %s1654_s1 = sld [smem:[#allocation9 + $0x7]] }
  0xba   :  { %v129_v1 = vmul.f32 %v128_v52, %v120_v49  ;;  %v130_v3 = vmul.f32 %v127_v51, %v121_v50  ;;  %v177_v49 = vld [vmem:[#allocation6 + $0x88] sm:$0xff]  ;;  %v481_v50 = vstv %s1563_s8  ;;  %v518_v51 = vstv %s1566_s9 }
  0xbb   :  { %v522_v52 = vstv %s1570_s10 }
  0xbc   :  { %v139_v45 = vpop.permute.xlu1 %138  ;;  %v137_v46 = vpop.permute.xlu0 %136  ;;  %v131_v26 = vadd.f32 %v129_v1, %v117_v15  ;;  %v132_v27 = vadd.f32 %v130_v3, %v118_v16  ;;  %v583_v3 = vstv %s1593_s23  ;;  %v599_v15 = vstv %s1613_s19  ;;  %s1451_s23 = smov [#allocation11]  }
  0xbd   :  { %v141_v61 = vsel %vm140_vm4, %v137_v46, %v139_v45  ;;  %v142_v62 = vsel %vm140_vm4, %v139_v45, %v137_v46  ;;  %v176_v46 = vld [vmem:[#allocation6 + $0x80] sm:$0xff]  ;;  %v648_v16 = vstv %s1624_s25 }
  0xbe   :  { %v143_v17 = vmul.f32 %v141_v61, %v134_v59  ;;  %v144_v18 = vmul.f32 %v142_v62, %v135_v60  ;;  %v428_v60 = vstv %s1580_s12  ;;  %v546_v61 = vstv %s1588_s13 }
  0xc0   :  { %v153_v4 = vpop.permute.xlu1 %152  ;;  %v151_v6 = vpop.permute.xlu0 %150  ;;  %v145_v40 = vadd.f32 %v143_v17, %v131_v26  ;;  %v146_v43 = vadd.f32 %v144_v18, %v132_v27  ;;  %v623_v26 = vstv %s1646_s30  ;;  %v664_v27 = vstv %s1638_s0 }
  0xc1   :  { %v155_v11 = vsel %vm154_vm5, %v151_v6, %v153_v4  ;;  %v156_v12 = vsel %vm154_vm5, %v153_v4, %v151_v6  ;;  %v587_v4 = vstv %s1601_s24  ;;  %s1237_s24 = sshll.u32 %s1451_s23, 4  ;;  %s1238_s24 = int_to_ptr.vmem [resolvable:$true] %s1237_s24 }
  0xc2   :  { %v157_v28 = vmul.f32 %v155_v11, %v148_v9  ;;  %v158_v29 = vmul.f32 %v156_v12, %v149_v10  ;;  %v493_v12 = vstv %s1605_s4  ;;  %s1407_s19 = scalar_lea.vmem %s1238_s24, 512  ;;  %p1412_p7 = scmp.lt.s32.totalorder %s1238_s24, %s1238_s24 }
  0xc3   :  { %p1408_p6 = scmp.ne.s32.totalorder %s1238_s24, %s1407_s19  ;;  %p1413_p8 = scmp.lt.s32.totalorder %s1407_s19, %s1407_s19 }
  0xc4   :  { %v167_v30 = vpop.permute.xlu1 %166  ;;  %v165_v33 = vpop.permute.xlu0 %164  ;;  %v159_v56 = vadd.f32 %v157_v28, %v145_v40  ;;  %v160_v57 = vadd.f32 %v158_v29, %v146_v43  ;;  %v676_v28 = vstv %s1644_s28  ;;  %v688_v29 = vstv %s1654_s1 }
  0xc5   :  { %v169_v34 = vsel %vm168_vm6, %v165_v33, %v167_v30  ;;  %v170_v37 = vsel %vm168_vm6, %v167_v30, %v165_v33  ;;  %p1414_p9 = por %p1413_p8, %p1412_p7 }
  0xc6   :  { %v171_v44 = vmul.f32 %v169_v34, %v162_v19  ;;  %v172_v45 = vmul.f32 %v170_v37, %v163_v20  ;;  %v558_v19 = vstv %s1636_s26  ;;  %v652_v20 = vstv %s1628_s22 }
  0xc7   :  { %p1415_p10 = pnand %p1414_p9, %p1408_p6 }
  0xc8   :  { %v181_v58 = vpop.permute.xlu1 %180  ;;  %v179_v59 = vpop.permute.xlu0 %178  ;;  %v173_v6 = vadd.f32 %v171_v44, %v159_v56  ;;  %v174_v9 = vadd.f32 %v172_v45, %v160_v57 }
  0xc9   :  { %v183_v62 = vsel %vm182_vm7, %v179_v59, %v181_v58  ;;  %v184_v1 = vsel %vm182_vm7, %v181_v58, %v179_v59 }
  0xca   :  { %v185_v10 = vmul.f32 %v183_v62, %v176_v46  ;;  %v186_v11 = vmul.f32 %v184_v1, %v177_v49 }
  0xcc   :  { %v1672_v17 = vadd.f32 %v185_v10, %v173_v6  ;;  %v1674_v18 = vadd.f32 %v186_v11, %v174_v9 }
  0xce   :  { %v191_v30 = vmul.f32 %v190_v31, %v1672_v17  ;;  %v192_v33 = vmul.f32 %v190_v31, %v1674_v18  ;;  %v195_v34 = vmul.f32 %v194_v32, %v1672_v17  ;;  %v196_v37 = vmul.f32 %v194_v32, %v1674_v18 }
  0xcf   :  { %v207_v40 = vmul.f32 %v206_v35, %v1672_v17  ;;  %v208_v43 = vmul.f32 %v206_v35, %v1674_v18  ;;  %v219_v44 = vmul.f32 %v218_v36, %v1672_v17  ;;  %v220_v31 = vmul.f32 %v218_v36, %v1674_v18 }
  0xd0   :  { %v199_v45 = vrot.slane %v195_v34, 1  ;;  %v200_v46 = vrot.slane %v196_v37, 1  ;;  %v259_v32 = vmul.f32 %v258_v41, %v1672_v17  ;;  %v260_v49 = vmul.f32 %v258_v41, %v1674_v18 }
  0xd1   :  { %v211_v56 = vrot.slane %v207_v40, 2  ;;  %v212_v57 = vrot.slane %v208_v43, 2  ;;  %v223_v35 = vrot.slane %v219_v44, 3  ;;  %v224_v58 = vrot.slane %v220_v31, 3 }
  0xd2   :  { %v203_v59 = vadd.f32 %v199_v45, %v191_v30  ;;  %v204_v62 = vadd.f32 %v200_v46, %v192_v33  ;;  %v263_v1 = vmul.f32 %v262_v42, %v1672_v17  ;;  %v264_v36 = vmul.f32 %v262_v42, %v1674_v18 }
  0xd3   :  { %v275_v6 = vmul.f32 %v274_v47, %v1672_v17  ;;  %v276_v9 = vmul.f32 %v274_v47, %v1674_v18  ;;  %v287_v41 = vmul.f32 %v286_v48, %v1672_v17  ;;  %v288_v10 = vmul.f32 %v286_v48, %v1674_v18 }
  0xd4   :  { %v215_v11 = vadd.f32 %v211_v56, %v203_v59  ;;  %v216_v30 = vadd.f32 %v212_v57, %v204_v62  ;;  %v267_v42 = vrot.slane %v263_v1, 1  ;;  %v268_v33 = vrot.slane %v264_v36, 1 }
  0xd5   :  { %v279_v47 = vrot.slane %v275_v6, 2  ;;  %v280_v37 = vrot.slane %v276_v9, 2  ;;  %v291_v40 = vrot.slane %v287_v41, 3  ;;  %v292_v43 = vrot.slane %v288_v10, 3 }
  0xd6   :  { %v227_v48 = vadd.f32 %v223_v35, %v215_v11  ;;  %v228_v44 = vadd.f32 %v224_v58, %v216_v30  ;;  %v271_v31 = vadd.f32 %v267_v42, %v259_v32  ;;  %v272_v45 = vadd.f32 %v268_v33, %v260_v49 }
  0xd7   :  { %v324_v46 = vmul.f32 %v323_v53, %v1672_v17  ;;  %v325_v2 = vmul.f32 %v323_v53, %v1674_v18  ;;  %v328_v56 = vmul.f32 %v327_v54, %v1672_v17  ;;  %v329_v57 = vmul.f32 %v327_v54, %v1674_v18 }
  0xd8   :  { %v1749_v59 = vadd.f32 %v230_v63, %v227_v48  ;;  %v1753_v35 = vadd.f32 %v230_v63, %v228_v44  ;;  %v283_v32 = vadd.f32 %v279_v47, %v271_v31  ;;  %v284_v49 = vadd.f32 %v280_v37, %v272_v45 }
  0xd9   :  { %v332_v58 = vrot.slane %v328_v56, 1  ;;  %v333_v62 = vrot.slane %v329_v57, 1  ;;  %v340_v53 = vmul.f32 %v339_v0, %v1672_v17  ;;  %v341_v1 = vmul.f32 %v339_v0, %v1674_v18 }
  0xda   :  { %v235_v54 = vcombine.low %v1749_v59, %v1753_v35  ;;  %v295_v36 = vadd.f32 %v291_v40, %v283_v32  ;;  %v296_v63 = vadd.f32 %v292_v43, %v284_v49  ;;  %v352_v6 = vmul.f32 %v351_v7, %v1672_v17 }
  0xdb   :  { %v336_v9 = vadd.f32 %v332_v58, %v324_v46  ;;  %v337_v41 = vadd.f32 %v333_v62, %v325_v2  ;;  %v344_v10 = vrot.slane %v340_v53, 2  ;;  %v345_v11 = vrot.slane %v341_v1, 2 }
  0xdc   :  { %v242_v30 = vrot.slane %v235_v54, %v1575_v24  ;;  %v1769_v0 = vadd.f32 %v298_v13, %v295_v36  ;;  %v1773_v42 = vadd.f32 %v298_v13, %v296_v63  ;;  %v353_v33 = vmul.f32 %v351_v7, %v1674_v18 }
  0xdd   :  { %v348_v47 = vadd.f32 %v344_v10, %v336_v9  ;;  %v349_v37 = vadd.f32 %v345_v11, %v337_v41  ;;  %v356_v40 = vrot.slane %v352_v6, 3  ;;  %v389_v43 = vmul.f32 %v388_v8, %v1672_v17 }
  0xde   :  { %v249_v48 = vrot.slane %v242_v30, %v1575_v24  ;;  %v303_v44 = vcombine.low %v1769_v0, %v1773_v42  ;;  %v357_v31 = vrot.slane %v353_v33, 3  ;;  %v390_v13 = vmul.f32 %v388_v8, %v1674_v18 }
  0xdf   :  { %v360_v7 = vadd.f32 %v356_v40, %v348_v47  ;;  %v393_v45 = vmul.f32 %v392_v14, %v1672_v17  ;;  %v394_v46 = vmul.f32 %v392_v14, %v1674_v18  ;;  %v405_v2 = vmul.f32 %v404_v21, %v1672_v17 }
  0xe0   :  { %255 = vst.msk [vmem:[#allocation11] ss:$8 sm:$0x3] %vm1731_vm8, %v249_v48  ;;  %v310_v56 = vrot.slane %v303_v44, %v1575_v24  ;;  %v361_v57 = vadd.f32 %v357_v31, %v349_v37  ;;  %v406_v8 = vmul.f32 %v404_v21, %v1674_v18  ;;  %v417_v32 = vmul.f32 %v416_v22, %v1672_v17 }
  0xe1   :  { %v1807_v49 = vadd.f32 %v363_v38, %v360_v7  ;;  %v397_v14 = vrot.slane %v393_v45, 1  ;;  %v398_v58 = vrot.slane %v394_v46, 1  ;;  %v409_v62 = vrot.slane %v405_v2, 2 }
  0xe2   :  { %v317_v53 = vrot.slane %v310_v56, %v1575_v24  ;;  %v1812_v1 = vadd.f32 %v363_v38, %v361_v57  ;;  %v410_v54 = vrot.slane %v406_v8, 2  ;;  %v418_v21 = vmul.f32 %v416_v22, %v1674_v18 }
  0xe3   :  { %v401_v36 = vadd.f32 %v397_v14, %v389_v43  ;;  %v402_v63 = vadd.f32 %v398_v58, %v390_v13  ;;  %v421_v6 = vrot.slane %v417_v32, 3  ;;  %v454_v9 = vmul.f32 %v453_v23, %v1672_v17 }
  0xe4   :  { %320 = vst.msk [vmem:[#allocation11 + $0x1] ss:$8 sm:$0x3] %vm1731_vm8, %v317_v53  ;;  %v368_v41 = vcombine.low %v1807_v49, %v1812_v1  ;;  %v422_v38 = vrot.slane %v418_v21, 3  ;;  %v455_v10 = vmul.f32 %v453_v23, %v1674_v18  ;;  %v458_v22 = vmul.f32 %v457_v25, %v1672_v17 }
  0xe5   :  { %v413_v11 = vadd.f32 %v409_v62, %v401_v36  ;;  %v414_v30 = vadd.f32 %v410_v54, %v402_v63  ;;  %v459_v33 = vmul.f32 %v457_v25, %v1674_v18  ;;  %v470_v47 = vmul.f32 %v469_v39, %v1672_v17 }
  0xe6   :  { %v375_v37 = vrot.slane %v368_v41, %v1575_v24  ;;  %v462_v40 = vrot.slane %v458_v22, 1  ;;  %v471_v23 = vmul.f32 %v469_v39, %v1674_v18  ;;  %v482_v43 = vmul.f32 %v481_v50, %v1672_v17 }
  0xe7   :  { %v425_v48 = vadd.f32 %v421_v6, %v413_v11  ;;  %v426_v44 = vadd.f32 %v422_v38, %v414_v30  ;;  %v463_v31 = vrot.slane %v459_v33, 1  ;;  %v474_v13 = vrot.slane %v470_v47, 2 }
  0xe8   :  { %v382_v25 = vrot.slane %v375_v37, %v1575_v24  ;;  %v466_v7 = vadd.f32 %v462_v40, %v454_v9  ;;  %v475_v45 = vrot.slane %v471_v23, 2  ;;  %v483_v46 = vmul.f32 %v481_v50, %v1674_v18 }
  0xe9   :  { %v1849_v39 = vadd.f32 %v428_v60, %v425_v48  ;;  %v1853_v2 = vadd.f32 %v428_v60, %v426_v44  ;;  %v467_v56 = vadd.f32 %v463_v31, %v455_v10  ;;  %v486_v57 = vrot.slane %v482_v43, 3 }
  0xea   :  { %385 = vst.msk [vmem:[#allocation11 + $0x2] ss:$8 sm:$0x3] %vm1731_vm8, %v382_v25  ;;  %v478_v8 = vadd.f32 %v474_v13, %v466_v7  ;;  %v487_v32 = vrot.slane %v483_v46, 3  ;;  %v519_v14 = vmul.f32 %v518_v51, %v1672_v17  ;;  %v520_v50 = vmul.f32 %v518_v51, %v1674_v18 }
  0xeb   :  { %v433_v58 = vcombine.low %v1849_v39, %v1853_v2  ;;  %v479_v60 = vadd.f32 %v475_v45, %v467_v56  ;;  %v523_v62 = vmul.f32 %v522_v52, %v1672_v17  ;;  %v524_v53 = vmul.f32 %v522_v52, %v1674_v18 }
  0xec   :  { %v490_v54 = vadd.f32 %v486_v57, %v478_v8  ;;  %v535_v21 = vmul.f32 %v534_v55, %v1672_v17  ;;  %v536_v36 = vmul.f32 %v534_v55, %v1674_v18  ;;  %v547_v51 = vmul.f32 %v546_v61, %v1672_v17 }
  0xed   :  { %v440_v63 = vrot.slane %v433_v58, %v1575_v24  ;;  %v491_v6 = vadd.f32 %v487_v32, %v479_v60  ;;  %v527_v9 = vrot.slane %v523_v62, 1  ;;  %v528_v41 = vrot.slane %v524_v53, 1 }
  0xee   :  { %v1883_v38 = vadd.f32 %v493_v12, %v490_v54  ;;  %v539_v52 = vrot.slane %v535_v21, 2  ;;  %v540_v10 = vrot.slane %v536_v36, 2  ;;  %v548_v55 = vmul.f32 %v546_v61, %v1674_v18 }
  0xef   :  { %v447_v22 = vrot.slane %v440_v63, %v1575_v24  ;;  %v1891_v11 = vadd.f32 %v493_v12, %v491_v6  ;;  %v531_v30 = vadd.f32 %v527_v9, %v519_v14  ;;  %v532_v33 = vadd.f32 %v528_v41, %v520_v50 }
  0xf0   :  { %v551_v47 = vrot.slane %v547_v51, 3  ;;  %v552_v37 = vrot.slane %v548_v55, 3  ;;  %v584_v40 = vmul.f32 %v583_v3, %v1672_v17  ;;  %v585_v23 = vmul.f32 %v583_v3, %v1674_v18 }
  0xf1   :  { %450 = vst.msk [vmem:[#allocation11 + $0x3] ss:$8 sm:$0x3] %vm1731_vm8, %v447_v22  ;;  %v498_v61 = vcombine.low %v1883_v38, %v1891_v11  ;;  %v543_v43 = vadd.f32 %v539_v52, %v531_v30  ;;  %v544_v12 = vadd.f32 %v540_v10, %v532_v33  ;;  %v588_v48 = vmul.f32 %v587_v4, %v1672_v17 }
  0xf2   :  { %v589_v44 = vmul.f32 %v587_v4, %v1674_v18  ;;  %v600_v3 = vmul.f32 %v599_v15, %v1672_v17  ;;  %v601_v31 = vmul.f32 %v599_v15, %v1674_v18  ;;  %v612_v13 = vmul.f32 %v611_v5, %v1672_v17 }
  0xf3   :  { %v505_v25 = vrot.slane %v498_v61, %v1575_v24  ;;  %v555_v7 = vadd.f32 %v551_v47, %v543_v43  ;;  %v556_v45 = vadd.f32 %v552_v37, %v544_v12  ;;  %v592_v46 = vrot.slane %v588_v48, 1 }
  0xf4   :  { %v593_v56 = vrot.slane %v589_v44, 1  ;;  %v604_v57 = vrot.slane %v600_v3, 2  ;;  %v605_v4 = vrot.slane %v601_v31, 2  ;;  %v613_v8 = vmul.f32 %v611_v5, %v1674_v18 }
  0xf5   :  { %v512_v15 = vrot.slane %v505_v25, %v1575_v24  ;;  %v1925_v32 = vadd.f32 %v558_v19, %v555_v7  ;;  %v1929_v14 = vadd.f32 %v558_v19, %v556_v45  ;;  %v596_v50 = vadd.f32 %v592_v46, %v584_v40 }
  0xf6   :  { %v597_v58 = vadd.f32 %v593_v56, %v585_v23  ;;  %v616_v60 = vrot.slane %v612_v13, 3  ;;  %v617_v62 = vrot.slane %v613_v8, 3  ;;  %v649_v53 = vmul.f32 %v648_v16, %v1672_v17 }
  0xf7   :  { %515 = vst.msk [vmem:[#allocation11 + $0x4] ss:$8 sm:$0x3] %vm1731_vm8, %v512_v15  ;;  %v563_v5 = vcombine.low %v1925_v32, %v1929_v14  ;;  %v608_v54 = vadd.f32 %v604_v57, %v596_v50  ;;  %v650_v19 = vmul.f32 %v648_v16, %v1674_v18  ;;  %v653_v21 = vmul.f32 %v652_v20, %v1672_v17 }
  0xf8   :  { %v609_v36 = vadd.f32 %v605_v4, %v597_v58  ;;  %v654_v51 = vmul.f32 %v652_v20, %v1674_v18  ;;  %v665_v63 = vmul.f32 %v664_v27, %v1672_v17  ;;  %v666_v6 = vmul.f32 %v664_v27, %v1674_v18 }
  0xf9   :  { %v570_v9 = vrot.slane %v563_v5, %v1575_v24  ;;  %v620_v41 = vadd.f32 %v616_v60, %v608_v54  ;;  %v657_v52 = vrot.slane %v653_v21, 1  ;;  %v677_v16 = vmul.f32 %v676_v28, %v1672_v17 }
  0xfa   :  { %v621_v10 = vadd.f32 %v617_v62, %v609_v36  ;;  %v658_v55 = vrot.slane %v654_v51, 1  ;;  %v669_v22 = vrot.slane %v665_v63, 2  ;;  %v670_v30 = vrot.slane %v666_v6, 2 }
  0xfb   :  { %v577_v33 = vrot.slane %v570_v9, %v1575_v24  ;;  %v624_v20 = vadd.f32 %v623_v26, %v620_v41  ;;  %v661_v47 = vadd.f32 %v657_v52, %v649_v53  ;;  %v678_v37 = vmul.f32 %v676_v28, %v1674_v18 }
  0xfc   :  { %v625_v27 = vadd.f32 %v623_v26, %v621_v10  ;;  %v662_v40 = vadd.f32 %v658_v55, %v650_v19  ;;  %v681_v23 = vrot.slane %v677_v16, 3  ;;  %v758_v61 = vcombine.high %v1749_v59, %v1753_v35 }
  0xfd   :  { %580 = vst.msk [vmem:[#allocation11 + $0x5] ss:$8 sm:$0x3] %vm1731_vm8, %v577_v33  ;;  %v673_v17 = vadd.f32 %v669_v22, %v661_v47  ;;  %v682_v43 = vrot.slane %v678_v37, 3  ;;  %v823_v12 = vcombine.high %v1769_v0, %v1773_v42  ;;  %v888_v48 = vcombine.high %v1807_v49, %v1812_v1 }
  0xfe   :  { %v628_v18 = vcombine.low %v624_v20, %v625_v27  ;;  %v674_v28 = vadd.f32 %v670_v30, %v662_v40  ;;  %v765_v26 = vrot.slane %v758_v61, %v1575_v24  ;;  %v953_v59 = vcombine.high %v1849_v39, %v1853_v2 }
  0xff   :  { %v685_v35 = vadd.f32 %v681_v23, %v673_v17  ;;  %v830_v44 = vrot.slane %v823_v12, %v1575_v24  ;;  %v895_v3 = vrot.slane %v888_v48, %v1575_v24  ;;  %v1018_v31 = vcombine.high %v1883_v38, %v1891_v11 }
 0x100   :  { %v635_v0 = vrot.slane %v628_v18, %v1575_v24  ;;  %v686_v42 = vadd.f32 %v682_v43, %v674_v28  ;;  %v772_v49 = vrot.slane %v765_v26, %v1575_v24  ;;  %v960_v1 = vrot.slane %v953_v59, %v1575_v24 }
 0x101   :  { %v689_v13 = vadd.f32 %v688_v29, %v685_v35  ;;  %v837_v25 = vrot.slane %v830_v44, %v1575_v24  ;;  %v902_v39 = vrot.slane %v895_v3, %v1575_v24  ;;  %v1025_v2 = vrot.slane %v1018_v31, %v1575_v24 }
 0x102   :  { %v642_v7 = vrot.slane %v635_v0, %v1575_v24  ;;  %v690_v45 = vadd.f32 %v688_v29, %v686_v42  ;;  %775 = vst.msk [vmem:[#allocation11 + $0x10] ss:$8 sm:$0x3] %vm1731_vm8, %v772_v49  ;;  %v967_v38 = vrot.slane %v960_v1, %v1575_v24  ;;  %v1083_v11 = vcombine.high %v1925_v32, %v1929_v14 }
 0x103   :  { %840 = vst.msk [vmem:[#allocation11 + $0x11] ss:$8 sm:$0x3] %vm1731_vm8, %v837_v25  ;;  %905 = vst.msk [vmem:[#allocation11 + $0x12] ss:$8 sm:$0x3] %vm1731_vm8, %v902_v39  ;;  %v1032_v46 = vrot.slane %v1025_v2, %v1575_v24  ;;  %v1148_v56 = vcombine.high %v624_v20, %v625_v27 }
 0x104   :  { %645 = vst.msk [vmem:[#allocation11 + $0x6] ss:$8 sm:$0x3] %vm1731_vm8, %v642_v7  ;;  %v693_v29 = vcombine.low %v689_v13, %v690_v45  ;;  %970 = vst.msk [vmem:[#allocation11 + $0x13] ss:$8 sm:$0x3] %vm1731_vm8, %v967_v38  ;;  %v1090_v57 = vrot.slane %v1083_v11, %v1575_v24  ;;  %v1213_v4 = vcombine.high %v689_v13, %v690_v45 }
 0x105   :  { %1035 = vst.msk [vmem:[#allocation11 + $0x14] ss:$8 sm:$0x3] %vm1731_vm8, %v1032_v46  ;;  %v1155_v8 = vrot.slane %v1148_v56, %v1575_v24 }
 0x106   :  { %v700_v15 = vrot.slane %v693_v29, %v1575_v24  ;;  %v1097_v32 = vrot.slane %v1090_v57, %v1575_v24  ;;  %v1220_v14 = vrot.slane %v1213_v4, %v1575_v24 }
 0x107   :  { %v1162_v50 = vrot.slane %v1155_v8, %v1575_v24 }
 0x108   :  { %v707_v58 = vrot.slane %v700_v15, %v1575_v24  ;;  %1100 = vst.msk [vmem:[#allocation11 + $0x15] ss:$8 sm:$0x3] %vm1731_vm8, %v1097_v32  ;;  %v1227_v60 = vrot.slane %v1220_v14, %v1575_v24 }
 0x109   :  { %1165 = vst.msk [vmem:[#allocation11 + $0x16] ss:$8 sm:$0x3] %vm1731_vm8, %v1162_v50 }
 0x10a   :  { %710 = vst.msk [vmem:[#allocation11 + $0x7] ss:$8 sm:$0x3] %vm1731_vm8, %v707_v58  ;;  %1230 = vst.msk [vmem:[#allocation11 + $0x17] ss:$8 sm:$0x3] %vm1731_vm8, %v1227_v60 }
 0x10b   :  { %1418 = shalt.err (!%p1415_p10)
}
 0x10c   :  { %s2079_s21 = smov 16   ;;  %s2080_s22 = smov 256  }
 0x10d   :  { %s2081_s0 = sld [smem:[#allocation27_spill]] }
 0x113   :  { %1243 = dma.vmem_to_hbm [thread:$0]  %s1238_s24, 512, %s2081_s0, [#allocation4], %s2080_s22, %s2080_s22, %s2079_s21  }
 0x114   :  { %1435 = dma.done.wait [#allocation4], 512  }
 0x115   :  { %1436 = vsyncadd [#allocation4], 4294966784 }
 0x116   :  { %1247 = vsyncpa [#allocation3], 1 }
 0x117   :  { %1248 = vsyncpa [#allocation7], 1 }
 0x118   :  { %1249 = vsyncpa [#allocation4], 1 }
 0x119   :  { %1250 = vsyncpa [#allocation5], 1 }
 0x11a   :  { %1251 = vsyncpa [#allocation10], 1 }

</bundles_post_ra>
